<compile_context>
chip_gen: v6e
topology: v6e:2x2x1
jax: 0.10.0
libtpu: 0.0.40
codegen_flags: <defaults>
</compile_context>

<pallas_src>
import functools

import jax
import jax.numpy as jnp
from jax import lax
from jax.experimental import pallas as pl
from jax.experimental.pallas import tpu as pltpu


def _round_up(x, m):
    return (x + m - 1) // m * m


def _recon_loss_kernel(emb_pos_ref, cell_ref, emb_neg_ref, mat_t_ref,
                       loss_ref, acc_ref, *, n_rows, tile_n, margin, inv_denom):
    """Fused projection + scoring + MultiMarginLoss partial reduction.

    emb_pos_ref : (tile_n, D) f32  embeddings of the true tokens (row tile)
    cell_ref    : (tile_n, S) f32  diora outside_h rows (row tile)
    emb_neg_ref : (k, D)      f32  embeddings of the k negative samples
    mat_t_ref   : (D, S)      f32  projection matrix, pre-transposed
    loss_ref    : (1, 1)      f32  final mean multi-margin loss
    acc_ref     : (1, 1)      f32  running hinge-sum accumulator (VMEM scratch)
    """
    i = pl.program_id(0)

    @pl.when(i == 0)
    def _init():
        acc_ref[...] = jnp.zeros_like(acc_ref)

    mat_t = mat_t_ref[...]                                        # (D, S)

    # proj_pos = emb_pos @ mat^T  -> (tile_n, S)   (MXU)
    proj_pos = jnp.dot(emb_pos_ref[...], mat_t,
                       preferred_element_type=jnp.float32)
    # proj_neg = emb_neg @ mat^T  -> (k, S)        (tiny MXU op)
    proj_neg = jnp.dot(emb_neg_ref[...], mat_t,
                       preferred_element_type=jnp.float32)

    cell = cell_ref[...]                                          # (tile_n, S)

    # xp[r]    = <proj_pos[r], cell[r]>            -> (tile_n, 1)  (VPU + XLU)
    xp = jnp.sum(proj_pos * cell, axis=-1, keepdims=True)
    # xn[r, e] = <cell[r], proj_neg[e]>            -> (tile_n, k)  (MXU, A @ B^T)
    xn = lax.dot_general(cell, proj_neg,
                         dimension_numbers=(((1,), (1,)), ((), ())),
                         preferred_element_type=jnp.float32)

    # MultiMarginLoss (p=1, target class 0): hinge against every negative.
    hinge = jnp.maximum(margin - xp + xn, 0.0)                    # (tile_n, k)

    # Mask rows past the true batch_size * length (zero-padded tail tile).
    row = i * tile_n + lax.broadcasted_iota(jnp.int32, (tile_n, 1), 0)
    hinge = jnp.where(row < n_rows, hinge, 0.0)

    tile_sum = jnp.sum(jnp.sum(hinge, axis=1, keepdims=True),
                       axis=0, keepdims=True)                     # (1, 1)
    acc_ref[...] += tile_sum

    @pl.when(i == pl.num_programs(0) - 1)
    def _finalize():
        loss_ref[...] = acc_ref[...] * inv_denom


def reconstruction_loss(sentences, neg_samples, embeddings, mat, outside_h,
                        *, margin=1.0, tile_n=128):
    """Pallas implementation of ReconstructionLoss.forward.

    sentences   : (B, L)    int32  token ids
    neg_samples : (k,)      int32  negative-sample token ids
    embeddings  : (V, D)    f32    embedding table (self.embeddings.weight)
    mat         : (S, D)    f32    projection parameter (self.mat)
    outside_h   : (B, T, S) f32    diora.outside_h  (T >= L)
    returns (loss, {'reconstruction_loss': loss})
    """
    batch_size, length = sentences.shape
    k = int(neg_samples.shape[0])
    input_size = int(embeddings.shape[1])
    size = int(mat.shape[0])
    assert mat.shape == (size, input_size)
    assert outside_h.shape[-1] == size

    # Embedding gathers stay in XLA (data-dependent row gather; see TODO above).
    emb_pos = jnp.take(embeddings, sentences.reshape(-1), axis=0)    # (B*L, D)
    emb_neg = jnp.take(embeddings, neg_samples, axis=0)              # (k, D)
    cell = outside_h[:, :length].reshape(batch_size * length, size)  # (B*L, S)

    n = batch_size * length
    tile_n = min(tile_n, _round_up(n, 8))      # multiple of 8 (sublane rule)
    n_pad = _round_up(n, tile_n)
    if n_pad != n:
        emb_pos = jnp.pad(emb_pos, ((0, n_pad - n), (0, 0)))
        cell = jnp.pad(cell, ((0, n_pad - n), (0, 0)))
    grid_n = n_pad // tile_n

    mat_t = mat.T   # (D, S): one-time host-side transpose, plain A @ B in-kernel

    kernel = functools.partial(
        _recon_loss_kernel,
        n_rows=n, tile_n=tile_n, margin=float(margin),
        inv_denom=1.0 / float(n * (k + 1)))

    loss2d = pl.pallas_call(
        kernel,
        out_shape=jax.ShapeDtypeStruct((1, 1), jnp.float32),
        grid_spec=pltpu.PrefetchScalarGridSpec(
            num_scalar_prefetch=0,
            grid=(grid_n,),
            in_specs=[
                pl.BlockSpec((tile_n, input_size), lambda i: (i, 0)),  # emb_pos
                pl.BlockSpec((tile_n, size), lambda i: (i, 0)),        # cell
                pl.BlockSpec((k, input_size), lambda i: (0, 0)),       # emb_neg
                pl.BlockSpec((input_size, size), lambda i: (0, 0)),    # mat^T
            ],
            out_specs=pl.BlockSpec((1, 1), lambda i: (0, 0)),
            scratch_shapes=[pltpu.VMEM((1, 1), jnp.float32)],
        ),
        compiler_params=pltpu.CompilerParams(
            # single grid axis carries the shared scalar accumulator -> reduction
            dimension_semantics=("arbitrary",),
            vmem_limit_bytes=32 << 20,   # modest; safe on v7x's 64 MiB VMEM
        ),
    )(emb_pos, cell, emb_neg, mat_t)

    loss = loss2d[0, 0]
    return loss, dict(reconstruction_loss=loss)


def _reference_loss(sentences, neg_samples, embeddings, mat, outside_h, margin):
    """Pure-JAX reference mirroring the PyTorch forward."""
    b, l = sentences.shape
    k = neg_samples.shape[0]
    emb_pos = embeddings[sentences]                               # (B, L, D)
    emb_neg = embeddings[neg_samples]                             # (k, D)
    cell = outside_h[:, :l]                                       # (B, L, S)
    proj_pos = emb_pos @ mat.T                                    # (B, L, S)
    proj_neg = emb_neg @ mat.T                                    # (k, S)
    xp = jnp.einsum('blc,blc->bl', proj_pos, cell)[..., None]     # (B, L, 1)
    xn = jnp.einsum('ec,blc->ble', proj_neg, cell)                # (B, L, k)
    score = jnp.concatenate([xp, xn], axis=2).reshape(b * l, k + 1)
    hinge = jnp.maximum(0.0, margin - score[:, :1] + score[:, 1:])
    return jnp.mean(jnp.sum(hinge, axis=1) / (k + 1))


if __name__ == "__main__":
    B, L, K_NEG = 2, 8, 3
    VOCAB, INPUT_SIZE, SIZE = 50, 64, 32
    MARGIN = 1.0

    key = jax.random.PRNGKey(0)
    k_emb, k_mat, k_out, k_sent, k_negs = jax.random.split(key, 5)

    embeddings = jax.random.normal(k_emb, (VOCAB, INPUT_SIZE), dtype=jnp.float32)
    # reset_parameters(): self.mat.data.normal_()
    mat = jax.random.normal(k_mat, (SIZE, INPUT_SIZE), dtype=jnp.float32)
    outside_h = jax.random.normal(k_out, (B, L, SIZE), dtype=jnp.float32)
    sentences = jax.random.randint(k_sent, (B, L), 0, VOCAB, dtype=jnp.int32)
    neg_samples = jax.random.randint(k_negs, (K_NEG,), 0, VOCAB, dtype=jnp.int32)

    # tile_n=8 -> grid of 2 steps, exercising the pipelined row tiling and the
    # accumulator init / finalize path.
    loss, ret = reconstruction_loss(sentences, neg_samples, embeddings, mat,
                                    outside_h, margin=MARGIN, tile_n=8)
    loss = jax.block_until_ready(loss)

    ref = jax.block_until_ready(
        _reference_loss(sentences, neg_samples, embeddings, mat, outside_h, MARGIN))

    assert loss.shape == (), loss.shape
    assert loss.dtype == jnp.float32, loss.dtype
    assert bool(jnp.isfinite(loss)), float(loss)
    assert "reconstruction_loss" in ret
    assert abs(float(loss) - float(ref)) <= 2e-2 * max(1.0, abs(float(ref))), \
        (float(loss), float(ref))
    print("KERNEL_OK")
</pallas_src>

<mosaic_0001>
module attributes {stable_mosaic.version = 11 : i64} {
  func.func @_recon_loss_kernel(%arg0: i32, %arg1: memref<8x64xf32, #tpu.memory_space<vmem>>, %arg2: memref<8x32xf32, #tpu.memory_space<vmem>>, %arg3: memref<3x64xf32, #tpu.memory_space<vmem>>, %arg4: memref<64x32xf32, #tpu.memory_space<vmem>>, %arg5: memref<1x1xf32, #tpu.memory_space<vmem>>, %arg6: memref<1x1xf32, #tpu.memory_space<vmem>>) attributes {dimension_semantics = [#tpu.dimension_semantics<arbitrary>], iteration_bounds = array<i64: 2>, scalar_prefetch = 0 : i64, scratch_operands = 1 : i64, tpu.core_type = #tpu.core_type<tc>, window_params = [{transform_indices = @transform_0, window_bounds = array<i64: 8, 64>}, {transform_indices = @transform_1, window_bounds = array<i64: 8, 32>}, {pipeline_mode = #tpu.pipeline_mode<synchronous>, transform_indices = @transform_2, window_bounds = array<i64: 3, 64>}, {pipeline_mode = #tpu.pipeline_mode<synchronous>, transform_indices = @transform_3, window_bounds = array<i64: 64, 32>}, {pipeline_mode = #tpu.pipeline_mode<synchronous>, transform_indices = @transform_4, window_bounds = array<i64: 1, 1>}]} {
    %c0_i32 = arith.constant 0 : i32
    %0 = arith.cmpi eq, %arg0, %c0_i32 : i32
    %1 = arith.extui %0 : i1 to i32
    %c0_i32_0 = arith.constant 0 : i32
    %2 = arith.cmpi ne, %1, %c0_i32_0 : i32
    scf.if %2 {
      %cst_21 = arith.constant 0.000000e+00 : f32
      %39 = vector.broadcast %cst_21 : f32 to vector<1x1xf32>
      %c0_22 = arith.constant 0 : index
      %c0_23 = arith.constant 0 : index
      %40 = vector.load %arg6[%c0_22, %c0_23] : memref<1x1xf32, #tpu.memory_space<vmem>>, vector<1x1xf32>
      tpu.vector_store %arg6[%c0_22, %c0_23], %39 {strides = array<i32>} : memref<1x1xf32, #tpu.memory_space<vmem>>, vector<1x1xf32>,
    } else {
    }
    %c0 = arith.constant 0 : index
    %c0_1 = arith.constant 0 : index
    %3 = vector.load %arg4[%c0, %c0_1] : memref<64x32xf32, #tpu.memory_space<vmem>>, vector<64x32xf32>
    %c0_2 = arith.constant 0 : index
    %c0_3 = arith.constant 0 : index
    %4 = vector.load %arg1[%c0_2, %c0_3] : memref<8x64xf32, #tpu.memory_space<vmem>>, vector<8x64xf32>
    %cst = arith.constant dense<0.000000e+00> : vector<8x32xf32>
    %5 = tpu.matmul %4, %3, %cst {dimension_numbers = #tpu.dot_dimension_numbers<[1], [0], [0], [1], [0, 0, 1, 1], [], []>} : vector<8x64xf32>, vector<64x32xf32>, vector<8x32xf32> -> vector<8x32xf32>
    %c0_4 = arith.constant 0 : index
    %c0_5 = arith.constant 0 : index
    %6 = vector.load %arg3[%c0_4, %c0_5] : memref<3x64xf32, #tpu.memory_space<vmem>>, vector<3x64xf32>
    %cst_6 = arith.constant dense<0.000000e+00> : vector<3x32xf32>
    %7 = tpu.matmul %6, %3, %cst_6 {dimension_numbers = #tpu.dot_dimension_numbers<[1], [0], [0], [1], [0, 0, 1, 1], [], []>} : vector<3x64xf32>, vector<64x32xf32>, vector<3x32xf32> -> vector<3x32xf32>
    %c0_7 = arith.constant 0 : index
    %c0_8 = arith.constant 0 : index
    %8 = vector.load %arg2[%c0_7, %c0_8] : memref<8x32xf32, #tpu.memory_space<vmem>>, vector<8x32xf32>
    %9 = arith.mulf %5, %8 : vector<8x32xf32>
    %cst_9 = arith.constant dense<0.000000e+00> : vector<8xf32>
    %10 = vector.multi_reduction <add>, %9, %cst_9 [1] : vector<8x32xf32> to vector<8xf32>
    %11 = vector.shape_cast %10 : vector<8xf32> to vector<8x1xf32>
    %cst_10 = arith.constant dense<0.000000e+00> : vector<8x3xf32>
    %12 = tpu.matmul %8, %7, %cst_10 {dimension_numbers = #tpu.dot_dimension_numbers<[1], [1], [0], [0], [0, 0, 1, 0], [], []>} : vector<8x32xf32>, vector<3x32xf32>, vector<8x3xf32> -> vector<8x3xf32>
    %cst_11 = arith.constant 1.000000e+00 : f32
    %13 = vector.broadcast %cst_11 : f32 to vector<8x1xf32>
    %14 = arith.subf %13, %11 : vector<8x1xf32>
    %15 = vector.broadcast %14 : vector<8x1xf32> to vector<8x3xf32>
    %16 = arith.addf %15, %12 : vector<8x3xf32>
    %cst_12 = arith.constant 0.000000e+00 : f32
    %17 = vector.broadcast %cst_12 : f32 to vector<8x3xf32>
    %18 = arith.maximumf %16, %17 : vector<8x3xf32>
    %c8_i32 = arith.constant 8 : i32
    %19 = arith.muli %arg0, %c8_i32 : i32
    %20 = tpu.iota {dimensions = array<i32: 0>} : vector<8x1xi32>
    %21 = vector.broadcast %19 : i32 to vector<8x1xi32>
    %22 = arith.addi %21, %20 : vector<8x1xi32>
    %c16_i32 = arith.constant 16 : i32
    %23 = vector.broadcast %c16_i32 : i32 to vector<8x1xi32>
    %24 = arith.cmpi slt, %22, %23 : vector<8x1xi32>
    %cst_13 = arith.constant 0.000000e+00 : f32
    %25 = vector.shape_cast %24 : vector<8x1xi1> to vector<8x1xi1>
    %26 = vector.broadcast %25 : vector<8x1xi1> to vector<8x3xi1>
    %27 = vector.broadcast %cst_13 : f32 to vector<8x3xf32>
    %28 = arith.select %26, %18, %27 : vector<8x3xi1>, vector<8x3xf32>
    %cst_14 = arith.constant dense<0.000000e+00> : vector<8xf32>
    %29 = vector.multi_reduction <add>, %28, %cst_14 [1] : vector<8x3xf32> to vector<8xf32>
    %30 = vector.shape_cast %29 : vector<8xf32> to vector<8x1xf32>
    %cst_15 = arith.constant dense<0.000000e+00> : vector<1xf32>
    %31 = vector.multi_reduction <add>, %30, %cst_15 [0] : vector<8x1xf32> to vector<1xf32>
    %32 = vector.shape_cast %31 : vector<1xf32> to vector<1x1xf32>
    %c0_16 = arith.constant 0 : index
    %c0_17 = arith.constant 0 : index
    %33 = vector.load %arg6[%c0_16, %c0_17] : memref<1x1xf32, #tpu.memory_space<vmem>>, vector<1x1xf32>
    %34 = arith.addf %33, %32 : vector<1x1xf32>
    %c0_18 = arith.constant 0 : index
    %c0_19 = arith.constant 0 : index
    %35 = vector.load %arg6[%c0_18, %c0_19] : memref<1x1xf32, #tpu.memory_space<vmem>>, vector<1x1xf32>
    tpu.vector_store %arg6[%c0_18, %c0_19], %34 {strides = array<i32>} : memref<1x1xf32, #tpu.memory_space<vmem>>, vector<1x1xf32>,
    %c1_i32 = arith.constant 1 : i32
    %36 = arith.cmpi eq, %arg0, %c1_i32 : i32
    %37 = arith.extui %36 : i1 to i32
    %c0_i32_20 = arith.constant 0 : i32
    %38 = arith.cmpi ne, %37, %c0_i32_20 : i32
    scf.if %38 {
      %c0_21 = arith.constant 0 : index
      %c0_22 = arith.constant 0 : index
      %39 = vector.load %arg6[%c0_21, %c0_22] : memref<1x1xf32, #tpu.memory_space<vmem>>, vector<1x1xf32>
      %cst_23 = arith.constant 1.562500e-02 : f32
      %40 = vector.broadcast %cst_23 : f32 to vector<1x1xf32>
      %41 = arith.mulf %39, %40 : vector<1x1xf32>
      %c0_24 = arith.constant 0 : index
      %c0_25 = arith.constant 0 : index
      %42 = vector.load %arg5[%c0_24, %c0_25] : memref<1x1xf32, #tpu.memory_space<vmem>>, vector<1x1xf32>
      tpu.vector_store %arg5[%c0_24, %c0_25], %41 {strides = array<i32>} : memref<1x1xf32, #tpu.memory_space<vmem>>, vector<1x1xf32>,
    } else {
    }
    return
  }
  func.func @transform_0(%arg0: i32) -> (i32, i32) {
    %c0_i32 = arith.constant 0 : i32
    %c0_i32_0 = arith.constant 0 : i32
    return %arg0, %c0_i32 : i32, i32
  }
  func.func @transform_1(%arg0: i32) -> (i32, i32) {
    %c0_i32 = arith.constant 0 : i32
    %c0_i32_0 = arith.constant 0 : i32
    return %arg0, %c0_i32 : i32, i32
  }
  func.func @transform_2(%arg0: i32) -> (i32, i32) {
    %c0_i32 = arith.constant 0 : i32
    %c0_i32_0 = arith.constant 0 : i32
    %c0_i32_1 = arith.constant 0 : i32
    return %c0_i32, %c0_i32_0 : i32, i32
  }
  func.func @transform_3(%arg0: i32) -> (i32, i32) {
    %c0_i32 = arith.constant 0 : i32
    %c0_i32_0 = arith.constant 0 : i32
    %c0_i32_1 = arith.constant 0 : i32
    return %c0_i32, %c0_i32_0 : i32, i32
  }
  func.func @transform_4(%arg0: i32) -> (i32, i32) {
    %c0_i32 = arith.constant 0 : i32
    %c0_i32_0 = arith.constant 0 : i32
    %c0_i32_1 = arith.constant 0 : i32
    return %c0_i32, %c0_i32_0 : i32, i32
  }
}

</mosaic_0001>

<bundles_post_ra>
// kernel: tpu_custom_call.1
= control target key start
LH: loop header
LB: loop body
LE: loop exit
PB: predicated region body
PF: predicated region fallthrough
CT: control target
= control target key end

     0   :  { %9 = vsyncpa [#allocation4], 0  ;;  %s697_s15 = smov 0   ;;  %s769_s0 = inlined_call_operand.vmem [shape: f32[16,64], index: 0, kind: input, shape index: {}]   ;;  %s770_s1 = inlined_call_operand.vmem [shape: f32[16,32], index: 1, kind: input, shape index: {}]   ;;  %s771_s2 = inlined_call_operand.vmem [shape: f32[3,64], index: 2, kind: input, shape index: {}]   ;;  %s772_s3 = inlined_call_operand.vmem [shape: f32[64,32], index: 3, kind: input, shape index: {}]   ;;  %s773_s4 = inlined_call_operand.hbm [shape: f32[1,1], index: 4, kind: output, shape index: {}]  }
   0x1 LB: > { %s703_s16 = sadd.s32 4294967295, %s666_s15   ;;  %p537_p0 = scmp.ge.s32.totalorder %s666_s15, 1  ;;  %s666_s15 = sphi %s697_s15, %s15_s15  }
   0x2   : > { %p166_p1 = scmp.lt.s32.totalorder %s666_s15, 3 }
   0x4   : > { %p167_p2 = pnand %p537_p0, %p166_p1 }
   0x5   : > { %p190_p3 = scmp.lt.s32.totalorder (!%p167_p2), %s703_s16, 1  ;;  %p540_p4 = scmp.ne.s32.totalorder (!%p167_p2), %s703_s16, 0 }
   0x6   : > { %170 = sbr.rel (%p167_p2) target bundleno = 609 (0x261), region = 36 }
   0xb   : > { %s191_s17 = scalar_select %p190_p3, %s703_s16, 1 }
   0xc   : > { %201 = sbr.rel (%p540_p4) target bundleno = 19 (0x13), region = 40 }
   0xd   : > { %s538_s18 = sshll.u32 %s191_s17, 3 }
   0xe   : > { %s712_s21 = scalar_lea.vmem %s769_s0, %s538_s18  ;;  %s717_s24 = scalar_lea.vmem %s770_s1, %s538_s18 }
  0x11   : > { %vm202_vm0 = vcmask 0   ;;  %v668_v0 = vmov 0.0  }
  0x12   : > { %203 = vst.msk [vmem:[#allocation2] sm:$0x1] %vm202_vm0, %v668_v0 }
  0x13 PF: > { %v211_v1 = vld [vmem:[%s772_s3 + $0x38] sm:$0xff]  ;;  %v669_v2 = vmov 0.0   ;;  %v210_v3 = vld [vmem:[%s772_s3 + $0x30] sm:$0xff]  ;;  %vm670_vm1 = vmmov 0   ;;  %v209_v4 = vld [vmem:[%s772_s3 + $0x28] sm:$0xff]  ;;  %vm213_vm2 = vcmask 523264   ;;  %v447_v19 = vlaneseq }
  0x14   : > { %590 = vmatprep.subr.mxu1 %v669_v2  ;;  %606 = vmatprep.mubr.msk.f32.mxu1 %vm670_vm1, %v669_v2  ;;  %v208_v5 = vld [vmem:[%s772_s3 + $0x20] sm:$0xff]  ;;  %v207_v6 = vld [vmem:[%s772_s3 + $0x18] sm:$0xff]  ;;  %v206_v7 = vld [vmem:[%s772_s3 + $0x10] sm:$0xff]  ;;  %vm363_vm3 = vcmask 261120   ;;  %s545_s19 = sshll.u32 %s703_s16, 3  ;;  %vm455_vm5 = vcmask 23552  }
  0x15   : > { %591 = vmatpush3.msra.mxu1 %v211_v1  ;;  %571 = vmatprep.subr.mxu0 %v669_v2  ;;  %v205_v8 = vld [vmem:[%s772_s3 + $0x8] sm:$0xff]  ;;  %v204_v9 = vld [vmem:[%s772_s3] sm:$0xff]  ;;  %v448_v21 = vshrl.u32 %v447_v19, 7  ;;  %v449_v22 = vstv %s545_s19  ;;  %vm467_vm6 = vcmask 0   ;;  %p546_p5 = scmp.ne.s32.totalorder %s703_s16, 1 }
  0x16   : > { %592 = vmatprep.subr.mxu1 %v669_v2  ;;  %572 = vmatpush3.msra.mxu0 %v211_v1  ;;  %v287_v10 = vld [vmem:[%s771_s2] sm:$0x7] }
  0x17   : > { %593 = vmatpush3.msra.mxu1 %v210_v3  ;;  %573 = vmatprep.subr.mxu0 %v669_v2  ;;  %v212_v11 = vld [vmem:[%s712_s21] sm:$0xff]  ;;  %v450_v24 = vadd.s32 %v449_v22, %v448_v21 }
  0x18   : > { %594 = vmatprep.subr.mxu1 %v669_v2  ;;  %574 = vmatpush3.msra.mxu0 %v210_v3  ;;  %v361_v13 = vld [vmem:[%s717_s24] sm:$0xff] }
  0x19   : > { %595 = vmatpush3.msra.mxu1 %v209_v4  ;;  %575 = vmatprep.subr.mxu0 %v669_v2  ;;  %vm451_vm4 = vcmp.lt.s32.totalorder %v450_v24, 16  ;;  %v465_v37 = vld [vmem:[#allocation2] sm:$0x1] }
  0x1a   : > { %596 = vmatprep.subr.mxu1 %v669_v2  ;;  %576 = vmatpush3.msra.mxu0 %v209_v4 }
  0x1b   : > { %597 = vmatpush3.msra.mxu1 %v208_v5  ;;  %577 = vmatprep.subr.mxu0 %v669_v2 }
  0x1c   : > { %598 = vmatprep.subr.mxu1 %v669_v2  ;;  %578 = vmatpush3.msra.mxu0 %v208_v5 }
  0x1d   : > { %599 = vmatpush3.msra.mxu1 %v207_v6  ;;  %579 = vmatprep.subr.mxu0 %v669_v2 }
  0x1e   : > { %600 = vmatprep.subr.mxu1 %v669_v2  ;;  %580 = vmatpush3.msra.mxu0 %v207_v6 }
  0x1f   : > { %601 = vmatpush3.msra.mxu1 %v206_v7  ;;  %581 = vmatprep.subr.mxu0 %v669_v2 }
  0x20   : > { %602 = vmatprep.subr.mxu1 %v669_v2  ;;  %582 = vmatpush3.msra.mxu0 %v206_v7 }
  0x21   : > { %603 = vmatpush3.msra.mxu1 %v205_v8  ;;  %583 = vmatprep.subr.mxu0 %v669_v2 }
  0x22   : > { %604 = vmatprep.subr.mxu1 %v669_v2  ;;  %584 = vmatpush3.msra.mxu0 %v205_v8 }
  0x23   : > { %605 = vmatpush3.msra.mxu1 %v204_v9  ;;  %585 = vmatprep.subr.mxu0 %v669_v2 }
  0x24   : > { %607 = vmatmul.mubr.msk.f32.vlgmr.msra.gmra.mxu1 %vm213_vm2, %v287_v10  ;;  %586 = vmatpush3.msra.mxu0 %v204_v9 }
  0x25   : > { %587 = vmatprep.mubr.msk.f32.mxu0 %vm670_vm1, %v669_v2  ;;  %609 = vmatprep.subr.mxu0 %v669_v2 }
  0x26   : > { %588 = vmatmul.mubr.msk.f32.vlgmr.msra.gmra.mxu0 %vm213_vm2, %v212_v11 }
  0x27   : > { %611 = vmatprep.mubr.msk.f32.mxu0 %vm670_vm1, %v669_v2 }
  0xe4   : > { %v357_v12 = vpop.f32.mrf.mxu1 }
  0xe5   : > { %610 = vmatpush3.xpose.msk.msra.mxu0 %vm363_vm3, %v357_v12 }
  0xe6   : > { %v608_v14 = vpop.f32.mrf.mxu1  ;;  %v283_v15 = vpop.f32.mrf.mxu0 }
  0xe7   : > { %v362_v16 = vmul.f32 %v361_v13, %v283_v15 }
  0xe8   : > { %612 = vmatmul.mubr.msk.f32.vlgmr.msra.gmra.mxu0 %vm363_vm3, %v361_v13  ;;  %v589_v17 = vpop.f32.mrf.mxu0 }
  0xe9   : > { %v364_v18 = vsel %vm363_vm3, %v362_v16, 0.0 }
  0xea   : > { %365 = vadd.xlane.f32.xlu0 %v364_v18 }
 0x173   : > { %v366_v20 = vpop.xlane.xlu0 %365 }
 0x174   : > { %v443_v23 = vsub.f32 1.0, %v366_v20 }
 0x1a8   : > { %v439_v25 = vpop.f32.mrf.mxu0 }
 0x1a9   : > { %v444_v26 = vadd.f32 %v443_v23, %v439_v25 }
 0x1aa   : > { %v613_v27 = vpop.f32.mrf.mxu0 }
 0x1ab   : > { %v445_v28 = vmax.f32 %v444_v26, 0.0 }
 0x1ad   : > { %v454_v29 = vsel %vm451_vm4, %v445_v28, 0.0 }
 0x1ae   : > { %v456_v30 = vsel %vm455_vm5, %v454_v29, 0.0 }
 0x1af   : > { %457 = vadd.xlane.f32.xlu0 %v456_v30 }
 0x238   : > { %v458_v31 = vpop.xlane.xlu0 %457 }
 0x239   : > { %v459_v32 = vrot.slane %v458_v31, 4 }
 0x23b   : > { %v460_v33 = vadd.f32 %v459_v32, %v458_v31 }
 0x23d   : > { %v461_v34 = vrot.slane %v460_v33, 2 }
 0x23f   : > { %v462_v35 = vadd.f32 %v461_v34, %v460_v33 }
 0x241   : > { %v463_v36 = vrot.slane %v462_v35, 1 }
 0x243   : > { %v464_v38 = vadd.f32 %v463_v36, %v462_v35  ;;  %472 = sbr.rel (%p546_p5) target bundleno = 594 (0x252), region = 44 }
 0x245   : > { %v466_v39 = vadd.f32 %v465_v37, %v464_v38 }
 0x247   : > { %468 = vst.msk [vmem:[#allocation2] sm:$0x1] %vm467_vm6, %v466_v39 }
 0x24e   : > { %v473_v40 = vld [vmem:[#allocation2] sm:$0x1] }
 0x24f   : > { %v474_v41 = vmul.f32 0.015625, %v473_v40 }
 0x251   : > { %475 = vst.msk [vmem:[#allocation3] sm:$0x1] %vm467_vm6, %v474_v41 }
 0x252 PF: > { %p618_p6 = scmp.eq.s32.totalorder %s703_s16, 1  ;;  %s671_s20 = smov [#allocation3]  }
 0x253   : > { %s483_s21 = sshll.u32 %s671_s20, 4  ;;  %s484_s21 = int_to_ptr.vmem [resolvable:$true] %s483_s21 }
 0x254   : > { %s632_s22 = scalar_lea.vmem %s484_s21, 16  ;;  %s638_s23 = scalar_lea.vmem %s484_s21, 32 }
 0x255   : > { %p633_p7 = scmp.ne.s32.totalorder %s484_s21, %s632_s22  ;;  %p639_p10 = scmp.lt.s32.totalorder %s484_s21, %s484_s21 }
 0x256   : > { %p640_p11 = scmp.lt.s32.totalorder %s638_s23, %s632_s22 }
 0x257   : > { %p634_p8 = pnand %p633_p7, %p618_p6 }
 0x258   : > { %p641_p12 = por %p640_p11, %p639_p10 }
 0x259   : > { %p635_p9 = pneg %p634_p8 }
 0x25b   : > { %p642_p13 = pnand %p641_p12, %p635_p9 }
 0x25d   : > { %645 = shalt.err (!%p642_p13)
}
 0x25e   : > { %615 = dma.vmem_to_hbm [thread:$0]  (%p618_p6), %s484_s21, 16, %s773_s4, [#allocation4]  }
 0x25f   : > { %661 = dma.done.wait (%p618_p6), [#allocation4], 16  }
 0x260   : > { %663 = vsyncadd (%p618_p6), [#allocation4], 4294967280 }
 0x261 PF: > { %s15_s15 = sadd.s32 1, %s666_s15  }
 0x262   : > { %p12_p0 = scmp.ge.s32.totalorder %s15_s15, 4  }
 0x264   :  { %14 = sbr.rel (!%p12_p0) target bundleno = 1 (0x1), region = 74 }
 0x269   :  { %496 = vsyncpa [#allocation4], 1 }
 0x26a   :  { %498 = vsyncpa [#allocation4 + $0x1], 1 }

</bundles_post_ra>
